<compile_context>
chip_gen: v7x
topology: tpu7x:2x2x1
jax: 0.10.0
libtpu: 0.0.40
codegen_flags: <defaults>
</compile_context>

<pallas_src>
import functools

import jax
import jax.numpy as jnp
from jax import lax
from jax.experimental import pallas as pl
from jax.experimental.pallas import tpu as pltpu


def _round_up(x, m):
    return ((x + m - 1) // m) * m


def _cdiv(a, b):
    return -(-a // b)


def _vmem_defaults():
    """Per-generation VMEM knobs; conservative fallback if info unavailable."""
    try:
        cap = int(getattr(pltpu.get_tpu_info(), "vmem_capacity_bytes", 0))
    except Exception:
        cap = 0
    if cap >= 96 * 2**20:
        # v5e / v6e: 128 MiB physical VMEM -> big tiles, large scoped limit.
        return dict(tile_budget=48 << 20, fused_budget=40 << 20,
                    vmem_limit=64 << 20)
    # v7x (64 MiB physical) or unknown: stay conservative.
    return dict(tile_budget=20 << 20, fused_budget=16 << 20,
                vmem_limit=40 << 20)


# ---------------------------------------------------------------------------
# Fused fast path: pool + fc1(relu) + fc2(sigmoid) + scale, one read of x.
# ---------------------------------------------------------------------------
def _fused_kernel(x_ref, w1_ref, b1_ref, w2_ref, b2_ref, o_ref, *, inv_s):
    xv = x_ref[...]                                              # (C, S)
    pooled = jnp.sum(xv, axis=-1, keepdims=True,
                     dtype=jnp.float32) * inv_s                  # (C, 1)
    h = jnp.dot(w1_ref[...], pooled,
                preferred_element_type=jnp.float32) + b1_ref[...]  # (Cr, 1)
    h = jnp.maximum(h, 0.0)
    g = jnp.dot(w2_ref[...], h,
                preferred_element_type=jnp.float32) + b2_ref[...]  # (C, 1)
    g = jax.nn.sigmoid(g)
    # Multiply in x's dtype (no f32 materialization of the big slab); for
    # low-precision x the gate is rounded before the multiply (tiny tolerance).
    o_ref[...] = xv * g.astype(o_ref.dtype)


# ---------------------------------------------------------------------------
# Streaming pass 1: global-average-pool + fc1(relu) + fc2(sigmoid)  -> gate
# ---------------------------------------------------------------------------
def _pool_fc_kernel(x_ref, w1_ref, b1_ref, w2_ref, b2_ref, gate_ref, acc_ref,
                    *, inv_s, valid_last, tile):
    # TODO(synk): on v7x with small B, split the spatial reduction into two
    #             core-parallel partial sums so the second TensorCore is busy.
    t = pl.program_id(1)
    last = pl.num_programs(1) - 1

    @pl.when(t == 0)
    def _init():
        acc_ref[...] = jnp.zeros_like(acc_ref)

    if valid_last < tile:
        # Ragged spatial extent: the last tile's buffer holds unspecified data
        # beyond lane `valid_last`; mask it before the sum.  Interior tiles
        # take the unmasked path.
        @pl.when(t == last)
        def _acc_masked():
            xv = x_ref[...]
            lane = lax.broadcasted_iota(jnp.int32, xv.shape, dimension=1)
            xv = jnp.where(lane < valid_last, xv, 0)
            acc_ref[...] += jnp.sum(xv, axis=-1, keepdims=True,
                                    dtype=jnp.float32)

        @pl.when(t < last)
        def _acc_full():
            acc_ref[...] += jnp.sum(x_ref[...], axis=-1, keepdims=True,
                                    dtype=jnp.float32)
    else:
        acc_ref[...] += jnp.sum(x_ref[...], axis=-1, keepdims=True,
                                dtype=jnp.float32)

    @pl.when(t == last)
    def _finalize():
        pooled = acc_ref[...] * inv_s                            # (C, 1) mean
        h = jnp.dot(w1_ref[...], pooled,
                    preferred_element_type=jnp.float32) + b1_ref[...]
        h = jnp.maximum(h, 0.0)
        g = jnp.dot(w2_ref[...], h,
                    preferred_element_type=jnp.float32) + b2_ref[...]
        gate_ref[...] = jax.nn.sigmoid(g)


# ---------------------------------------------------------------------------
# Streaming pass 2: per-tile channel rescale   out = x * gate
# ---------------------------------------------------------------------------
def _scale_kernel(gate_ref, x_ref, o_ref):
    o_ref[...] = x_ref[...] * gate_ref[...].astype(o_ref.dtype)


def channel_attention_3d(x, w1, b1, w2, b2, *,
                         vmem_tile_budget_bytes=None,
                         fused_vmem_budget_bytes=None,
                         donate_x=False):
    """x: (B, C, D, H, W); w1: (Cr, C); b1: (Cr,); w2: (C, Cr); b2: (C,).

    donate_x: set True only when the caller actually donates x's buffer at the
    jit boundary; aliases the big output onto x to save an HBM allocation.
    """
    B, C, D, H, W = x.shape
    Cr = w1.shape[0]
    S = D * H * W
    itemsize = jnp.dtype(x.dtype).itemsize

    knobs = _vmem_defaults()
    tile_budget = (knobs["tile_budget"] if vmem_tile_budget_bytes is None
                   else vmem_tile_budget_bytes)
    fused_budget = (knobs["fused_budget"] if fused_vmem_budget_bytes is None
                    else fused_vmem_budget_bytes)
    vmem_limit = knobs["vmem_limit"]

    # Sublane packing: a (C, TS) block occupies round_up(C, pack) sublanes in
    # VMEM (f32 packs 8/vreg, bf16 16, int8/fp8 32).
    pack = max(1, 32 // itemsize)
    c_eff = _round_up(C, pack)

    x_flat = x.reshape(B, C, S)            # contiguous reshape: no HBM traffic
    w1f = w1.astype(jnp.float32)                     # (Cr, C)
    w2f = w2.astype(jnp.float32)                     # (C, Cr)
    b1c = b1.reshape(Cr, 1).astype(jnp.float32)      # (Cr, 1)
    b2c = b2.reshape(C, 1).astype(jnp.float32)       # (C, 1)
    inv_s = 1.0 / S

    # ---- Fused fast path: one (C, S) slab per batch element resident in VMEM.
    s_ceil = _round_up(S, 128)
    slab_native = c_eff * s_ceil * itemsize
    slab_f32 = _round_up(C, 8) * s_ceil * 4
    fused_fits = (4 * slab_native + 2 * slab_f32) <= fused_budget

    if fused_fits:
        out_flat = pl.pallas_call(
            functools.partial(_fused_kernel, inv_s=inv_s),
            out_shape=jax.ShapeDtypeStruct((B, C, S), x.dtype),
            grid_spec=pltpu.PrefetchScalarGridSpec(
                num_scalar_prefetch=0,
                grid=(B,),
                in_specs=[
                    pl.BlockSpec((None, C, S), lambda b: (b, 0, 0)),   # x slab
                    pl.BlockSpec((Cr, C), lambda b: (0, 0)),           # W1
                    pl.BlockSpec((Cr, 1), lambda b: (0, 0)),           # b1
                    pl.BlockSpec((C, Cr), lambda b: (0, 0)),           # W2
                    pl.BlockSpec((C, 1), lambda b: (0, 0)),            # b2
                ],
                out_specs=pl.BlockSpec((None, C, S), lambda b: (b, 0, 0)),
            ),
            compiler_params=pltpu.CompilerParams(
                dimension_semantics=("parallel",),
                vmem_limit_bytes=vmem_limit,
            ),
            input_output_aliases=({0: 0} if donate_x else {}),
        )(x_flat, w1f, b1c, w2f, b2c)
        return out_flat.reshape(B, C, D, H, W)

    # ---- Streaming path: two lane-dense passes over the UNPADDED (B, C, S).
    # Pass 1 double-buffers only its input (tiny (C,1) output) -> 2 blocks.
    ts1_max = max(128, (tile_budget // (2 * c_eff * itemsize)) // 128 * 128)
    n_t1 = _cdiv(S, ts1_max)
    ts1 = min(_round_up(_cdiv(S, n_t1), 128), _round_up(S, 128))
    n_t1 = _cdiv(S, ts1)
    rem1 = S - (n_t1 - 1) * ts1                 # valid lanes in the last tile

    gate = pl.pallas_call(
        functools.partial(_pool_fc_kernel, inv_s=inv_s,
                          valid_last=rem1, tile=ts1),
        out_shape=jax.ShapeDtypeStruct((B, C, 1), jnp.float32),
        grid_spec=pltpu.PrefetchScalarGridSpec(
            num_scalar_prefetch=0,
            grid=(B, n_t1),
            in_specs=[
                pl.BlockSpec((None, C, ts1), lambda b, t: (b, 0, t)),  # x tile
                pl.BlockSpec((Cr, C), lambda b, t: (0, 0)),            # W1
                pl.BlockSpec((Cr, 1), lambda b, t: (0, 0)),            # b1
                pl.BlockSpec((C, Cr), lambda b, t: (0, 0)),            # W2
                pl.BlockSpec((C, 1), lambda b, t: (0, 0)),             # b2
            ],
            out_specs=pl.BlockSpec((None, C, 1), lambda b, t: (b, 0, 0)),
            scratch_shapes=[pltpu.VMEM((C, 1), jnp.float32)],
        ),
        compiler_params=pltpu.CompilerParams(
            dimension_semantics=("parallel", "arbitrary"),
            vmem_limit_bytes=vmem_limit,
        ),
    )(x_flat, w1f, b1c, w2f, b2c)

    # Pass 2 double-buffers both input and output tiles -> 4 blocks.
    ts2_max = max(128, (tile_budget // (4 * c_eff * itemsize)) // 128 * 128)
    n_t2 = _cdiv(S, ts2_max)
    ts2 = min(_round_up(_cdiv(S, n_t2), 128), _round_up(S, 128))
    n_t2 = _cdiv(S, ts2)

    out_flat = pl.pallas_call(
        _scale_kernel,
        out_shape=jax.ShapeDtypeStruct((B, C, S), x.dtype),   # unpadded: only
        grid_spec=pltpu.PrefetchScalarGridSpec(               # the boundary
            num_scalar_prefetch=0,                            # block is clipped
            grid=(B, n_t2),
            in_specs=[
                pl.BlockSpec((None, C, 1), lambda b, t: (b, 0, 0)),    # gate
                pl.BlockSpec((None, C, ts2), lambda b, t: (b, 0, t)),  # x tile
            ],
            out_specs=pl.BlockSpec((None, C, ts2), lambda b, t: (b, 0, t)),
        ),
        compiler_params=pltpu.CompilerParams(
            dimension_semantics=("parallel", "parallel"),
            vmem_limit_bytes=vmem_limit,
        ),
        input_output_aliases=({1: 0} if donate_x else {}),
    )(gate, x_flat)

    return out_flat.reshape(B, C, D, H, W)


# ---------------------------------------------------------------------------
# Reference + tests
# ---------------------------------------------------------------------------
def _reference(x, w1, b1, w2, b2):
    y = jnp.mean(x, axis=(2, 3, 4))                          # (B, C)
    y = jnp.maximum(y @ w1.T + b1, 0.0)                      # (B, Cr)
    y = jax.nn.sigmoid(y @ w2.T + b2)                        # (B, C)
    return x * y[:, :, None, None, None]


def _run_case(key, B, C, reduction, D, H, W, **kwargs):
    Cr = max(1, C // reduction)
    kx, k1, k2, k3, k4 = jax.random.split(key, 5)
    x = jax.random.normal(kx, (B, C, D, H, W), dtype=jnp.float32)
    # Conv3d(C -> Cr, kernel 1): weight (Cr, C, 1, 1, 1) -> (Cr, C)
    w1 = jax.random.normal(k1, (Cr, C), dtype=jnp.float32) * 0.2
    b1 = jax.random.normal(k2, (Cr,), dtype=jnp.float32) * 0.1
    # Conv3d(Cr -> C, kernel 1): weight (C, Cr, 1, 1, 1) -> (C, Cr)
    w2 = jax.random.normal(k3, (C, Cr), dtype=jnp.float32) * 0.2
    b2 = jax.random.normal(k4, (C,), dtype=jnp.float32) * 0.1

    out = jax.block_until_ready(channel_attention_3d(x, w1, b1, w2, b2, **kwargs))
    ref = _reference(x, w1, b1, w2, b2)
    assert out.shape == (B, C, D, H, W)
    assert jnp.allclose(out, ref, atol=1e-5, rtol=1e-5), "mismatch vs reference"


if __name__ == "__main__":
    key = jax.random.PRNGKey(0)
    k_a, k_b, k_c = jax.random.split(key, 3)

    # Case 1: fused single-read path (whole (C, S) slab resident in VMEM).
    _run_case(k_a, B=2, C=8, reduction=2, D=8, H=8, W=8)

    # Case 2: fused path with a non-128-multiple spatial extent (full-extent
    # lane dim, no padding anywhere).
    _run_case(k_b, B=1, C=8, reduction=2, D=5, H=7, W=9)

    # Case 3: force the two-pass streaming path with multi-tile accumulation,
    # a masked ragged last tile in pass 1, and clipped boundary stores in
    # pass 2 (no HBM-side pad or trailing slice).
    _run_case(k_c, B=2, C=16, reduction=4, D=6, H=10, W=10,
              fused_vmem_budget_bytes=0,
              vmem_tile_budget_bytes=128 * 4 * 16 * 4)

    print("KERNEL_OK")
</pallas_src>

<mosaic_0001>
module attributes {stable_mosaic.version = 11 : i64} {
  func.func @_fused_kernel(%arg0: i32, %arg1: memref<1x8x512xf32, #tpu.memory_space<vmem>>, %arg2: memref<4x8xf32, #tpu.memory_space<vmem>>, %arg3: memref<4x1xf32, #tpu.memory_space<vmem>>, %arg4: memref<8x4xf32, #tpu.memory_space<vmem>>, %arg5: memref<8x1xf32, #tpu.memory_space<vmem>>, %arg6: memref<1x8x512xf32, #tpu.memory_space<vmem>>) attributes {dimension_semantics = [#tpu.dimension_semantics<parallel>], iteration_bounds = array<i64: 2>, scalar_prefetch = 0 : i64, scratch_operands = 0 : i64, tpu.core_type = #tpu.core_type<tc>, window_params = [{transform_indices = @transform_0, window_bounds = array<i64: 1, 8, 512>}, {pipeline_mode = #tpu.pipeline_mode<synchronous>, transform_indices = @transform_1, window_bounds = array<i64: 4, 8>}, {pipeline_mode = #tpu.pipeline_mode<synchronous>, transform_indices = @transform_2, window_bounds = array<i64: 4, 1>}, {pipeline_mode = #tpu.pipeline_mode<synchronous>, transform_indices = @transform_3, window_bounds = array<i64: 8, 4>}, {pipeline_mode = #tpu.pipeline_mode<synchronous>, transform_indices = @transform_4, window_bounds = array<i64: 8, 1>}, {transform_indices = @transform_5, window_bounds = array<i64: 1, 8, 512>}]} {
    %c0 = arith.constant 0 : index
    %c0_0 = arith.constant 0 : index
    %c0_1 = arith.constant 0 : index
    %0 = vector.load %arg1[%c0, %c0_0, %c0_1] : memref<1x8x512xf32, #tpu.memory_space<vmem>>, vector<1x8x512xf32>
    %1 = vector.shape_cast %0 : vector<1x8x512xf32> to vector<8x512xf32>
    %cst = arith.constant dense<0.000000e+00> : vector<8xf32>
    %2 = vector.multi_reduction <add>, %1, %cst [1] : vector<8x512xf32> to vector<8xf32>
    %3 = vector.shape_cast %2 : vector<8xf32> to vector<8x1xf32>
    %cst_2 = arith.constant 0.001953125 : f32
    %4 = vector.broadcast %cst_2 : f32 to vector<8x1xf32>
    %5 = arith.mulf %3, %4 : vector<8x1xf32>
    %c0_3 = arith.constant 0 : index
    %c0_4 = arith.constant 0 : index
    %6 = vector.load %arg2[%c0_3, %c0_4] : memref<4x8xf32, #tpu.memory_space<vmem>>, vector<4x8xf32>
    %cst_5 = arith.constant dense<0.000000e+00> : vector<4x1xf32>
    %7 = tpu.matmul %6, %5, %cst_5 {dimension_numbers = #tpu.dot_dimension_numbers<[1], [0], [0], [1], [0, 0, 1, 1], [], []>} : vector<4x8xf32>, vector<8x1xf32>, vector<4x1xf32> -> vector<4x1xf32>
    %c0_6 = arith.constant 0 : index
    %c0_7 = arith.constant 0 : index
    %8 = vector.load %arg3[%c0_6, %c0_7] : memref<4x1xf32, #tpu.memory_space<vmem>>, vector<4x1xf32>
    %9 = arith.addf %7, %8 : vector<4x1xf32>
    %cst_8 = arith.constant 0.000000e+00 : f32
    %10 = vector.broadcast %cst_8 : f32 to vector<4x1xf32>
    %11 = arith.maximumf %9, %10 : vector<4x1xf32>
    %c0_9 = arith.constant 0 : index
    %c0_10 = arith.constant 0 : index
    %12 = vector.load %arg4[%c0_9, %c0_10] : memref<8x4xf32, #tpu.memory_space<vmem>>, vector<8x4xf32>
    %cst_11 = arith.constant dense<0.000000e+00> : vector<8x1xf32>
    %13 = tpu.matmul %12, %11, %cst_11 {dimension_numbers = #tpu.dot_dimension_numbers<[1], [0], [0], [1], [0, 0, 1, 1], [], []>} : vector<8x4xf32>, vector<4x1xf32>, vector<8x1xf32> -> vector<8x1xf32>
    %c0_12 = arith.constant 0 : index
    %c0_13 = arith.constant 0 : index
    %14 = vector.load %arg5[%c0_12, %c0_13] : memref<8x1xf32, #tpu.memory_space<vmem>>, vector<8x1xf32>
    %15 = arith.addf %13, %14 : vector<8x1xf32>
    %16 = arith.negf %15 : vector<8x1xf32>
    %17 = math.exp %16 : vector<8x1xf32>
    %cst_14 = arith.constant 1.000000e+00 : f32
    %18 = vector.broadcast %cst_14 : f32 to vector<8x1xf32>
    %19 = arith.addf %18, %17 : vector<8x1xf32>
    %20 = arith.divf %18, %19 : vector<8x1xf32>
    %21 = vector.broadcast %20 : vector<8x1xf32> to vector<8x512xf32>
    %22 = arith.mulf %1, %21 : vector<8x512xf32>
    %c0_15 = arith.constant 0 : index
    %c0_16 = arith.constant 0 : index
    %c0_17 = arith.constant 0 : index
    %23 = vector.load %arg6[%c0_15, %c0_16, %c0_17] : memref<1x8x512xf32, #tpu.memory_space<vmem>>, vector<1x8x512xf32>
    %24 = vector.shape_cast %23 : vector<1x8x512xf32> to vector<8x512xf32>
    %25 = vector.shape_cast %22 : vector<8x512xf32> to vector<1x8x512xf32>
    tpu.vector_store %arg6[%c0_15, %c0_16, %c0_17], %25 {strides = array<i32>} : memref<1x8x512xf32, #tpu.memory_space<vmem>>, vector<1x8x512xf32>,
    return
  }
  func.func @transform_0(%arg0: i32) -> (i32, i32, i32) {
    %c0_i32 = arith.constant 0 : i32
    %c0_i32_0 = arith.constant 0 : i32
    %c0_i32_1 = arith.constant 0 : i32
    return %arg0, %c0_i32, %c0_i32_0 : i32, i32, i32
  }
  func.func @transform_1(%arg0: i32) -> (i32, i32) {
    %c0_i32 = arith.constant 0 : i32
    %c0_i32_0 = arith.constant 0 : i32
    %c0_i32_1 = arith.constant 0 : i32
    return %c0_i32, %c0_i32_0 : i32, i32
  }
  func.func @transform_2(%arg0: i32) -> (i32, i32) {
    %c0_i32 = arith.constant 0 : i32
    %c0_i32_0 = arith.constant 0 : i32
    %c0_i32_1 = arith.constant 0 : i32
    return %c0_i32, %c0_i32_0 : i32, i32
  }
  func.func @transform_3(%arg0: i32) -> (i32, i32) {
    %c0_i32 = arith.constant 0 : i32
    %c0_i32_0 = arith.constant 0 : i32
    %c0_i32_1 = arith.constant 0 : i32
    return %c0_i32, %c0_i32_0 : i32, i32
  }
  func.func @transform_4(%arg0: i32) -> (i32, i32) {
    %c0_i32 = arith.constant 0 : i32
    %c0_i32_0 = arith.constant 0 : i32
    %c0_i32_1 = arith.constant 0 : i32
    return %c0_i32, %c0_i32_0 : i32, i32
  }
  func.func @transform_5(%arg0: i32) -> (i32, i32, i32) {
    %c0_i32 = arith.constant 0 : i32
    %c0_i32_0 = arith.constant 0 : i32
    %c0_i32_1 = arith.constant 0 : i32
    return %arg0, %c0_i32, %c0_i32_0 : i32, i32, i32
  }
}

</mosaic_0001>

<bundles_post_ra>
// kernel: tpu_custom_call.1
= control target key start
LH: loop header
LB: loop body
LE: loop exit
PB: predicated region body
PF: predicated region fallthrough
CT: control target
= control target key end

     0   :  { %10 = vsyncpa [#allocation3], 0  ;;  %s910_s0 = inlined_call_operand.hbm [shape: f32[2,8,512], index: 0, kind: input, shape index: {}]   ;;  %s911_s1 = inlined_call_operand.vmem [shape: f32[4,8], index: 1, kind: input, shape index: {}]   ;;  %s912_s2 = inlined_call_operand.vmem [shape: f32[4,1], index: 2, kind: input, shape index: {}]   ;;  %s913_s3 = inlined_call_operand.vmem [shape: f32[8,4], index: 3, kind: input, shape index: {}]   ;;  %s914_s4 = inlined_call_operand.vmem [shape: f32[8,1], index: 4, kind: input, shape index: {}]   ;;  %s915_s5 = inlined_call_operand.hbm [shape: f32[2,8,512], index: 5, kind: output, shape index: {}]  }
   0x1   :  { %12 = vsyncpa [#allocation3 + $0x1], 0 }
   0x2   :  { %13 = vsyncpa [#allocation4], 0 }
   0x3   :  { %15 = vsyncpa [#allocation4 + $0x1], 0  ;;  %s733_s18 = smov 0   ;;  %s735_s19 = smov 0  }
   0x4   :  { %s737_s20 = smov 0   ;;  %s739_s21 = smov 0  }
   0x5 LB: > { %s754_s22 = sadd.s32 4294967295, %s696_s21   ;;  %s512_s23 = sadd.s32 4294967294, %s696_s21   ;;  %s696_s21 = sphi %s739_s21, %s930_s21   ;;  %s692_s20 = sphi %s737_s20, %s929_s20   ;;  %s688_s19 = sphi %s735_s19, %s928_s19   ;;  %s684_s18 = sphi %s733_s18, %s927_s18  }
   0x6   : > { %s758_s24 = sadd.s32 1, %s696_s21   ;;  %s28_s25 = sadd.s32 1, %s692_s20 }
   0x7   : > { %s25_s26 = ssub.s32 %s696_s21, %s758_s24  ;;  %p35_p0 = scmp.ne.s32.totalorder %s692_s20, %s688_s19 }
   0x8   : > { %p26_p1 = scmp.eq.s32.totalorder %s25_s26, 0  ;;  %p36_p2 = scmp.eq.s32.totalorder %s696_s21, 0 }
   0x9   : > { %p41_p3 = scmp.ne.s32.totalorder %s688_s19, %s684_s18  ;;  %p42_p4 = scmp.eq.s32.totalorder %s754_s22, 0 }
   0xa   : > { %s770_s27 = scalar_select %p26_p1, %s692_s20, %s28_s25  }
   0xb   : > { %p772_p5 = por %p36_p2, %p35_p0  ;;  %p776_p6 = por %p42_p4, %p41_p3 }
   0xc   : > { %p149_p7 = scmp.eq.s32.totalorder %s754_s22, 1  ;;  %p155_p8 = scmp.eq.s32.totalorder %s512_s23, 1 }
   0xd   : > { %p558_p10 = scmp.lt.s32.totalorder %s696_s21, 2  ;;  %s187_s7 = sand.u32 1, %s692_s20  }
   0xe   : > { %p783_p11 = por %p149_p7, %p35_p0  ;;  %p787_p12 = por %p155_p8, %p41_p3 }
   0xf   : > { %s530_s8 = sshll.u32 %s696_s21, 9  ;;  %s515_s9 = sshll.u32 %s187_s7, 5 }
  0x10   : > { %s919_s30 = scalar_select %p783_p11, 1, 0 }
  0x11   : > { %s920_s6 = scalar_select %p787_p12, 1, 0 }
  0x12   : > { %s796_s12 = scalar_lea.hbm %s910_s0, %s530_s8  ;;  %s191_s13 = scalar_lea.vmem [#allocation2], %s515_s9 }
  0x13   : > { %s199_s14 = sshll.u32 %s191_s13, 4  ;;  %p800_p13 = pnand %p558_p10, %p772_p5  ;;  %s804_s14 = int_to_ptr.vmem [resolvable:$true] %s199_s14 }
  0x14   : > { %s188_s16 = scalar_lea.sflag [#allocation3], %s187_s7  ;;  %s600_s17 = scalar_lea.hbm %s796_s12, 512 }
  0x15   : > { %p601_p2 = scmp.ne.s32.totalorder %s796_s12, %s600_s17  ;;  %p602_p3 = pneg %p800_p13 }
  0x16   : > { %s605_s26 = scalar_lea.hbm %s910_s0, 1024  ;;  %p606_p5 = scmp.lt.u32.totalorder %s796_s12, %s910_s0 }
  0x17   : > { %p603_p4 = pnand %p602_p3, %p601_p2  ;;  %p607_p8 = scmp.lt.u32.totalorder %s605_s26, %s600_s17 }
  0x18   : > { %p609_p9 = scmp.lt.u32.totalorder %s600_s17, %s796_s12 }
  0x19   : > { %p604_p7 = pneg %p603_p4  ;;  %p608_p10 = por %p607_p8, %p606_p5 }
  0x1b   : > { %p610_p0 = por %p609_p9, %p608_p10 }
  0x1d   : > { %p611_p1 = pnand %p610_p0, %p604_p7 }
  0x1f   : > { %614 = shalt.err (!%p611_p1)
}
  0x20   : > { %s615_s7 = scalar_lea.vmem %s804_s14, 512  ;;  %s698_s9 = smov [#allocation2]  }
  0x21   : > { %p616_p2 = scmp.ne.s32.totalorder %s804_s14, %s615_s7  ;;  %s620_s10 = sshll.u32 %s698_s9, 4  ;;  %s621_s10 = int_to_ptr.vmem [resolvable:$false] %s620_s10 }
  0x22   : > { %s622_s11 = scalar_lea.vmem %s621_s10, 1024  ;;  %p623_p11 = scmp.lt.s32.totalorder %s804_s14, %s621_s10 }
  0x23   : > { %p618_p4 = pnand %p616_p2, %p602_p3  ;;  %p624_p5 = scmp.lt.s32.totalorder %s622_s11, %s615_s7 }
  0x25   : > { %p619_p12 = pneg %p618_p4  ;;  %p625_p8 = por %p624_p5, %p623_p11 }
  0x27   : > { %p626_p9 = pnand %p625_p8, %p619_p12 }
  0x29   : > { %629 = shalt.err (!%p626_p9)
}
  0x2a   : > { %553 = dma.hbm_to_vmem [thread:$0]  (!%p800_p13), %s796_s12, 512, %s804_s14, %s188_s16  }
  0x2b   : > { %p922_p0 = scmp.lt.s32.totalorder %s696_s21, 3  ;;  %p923_p1 = scmp.ge.s32.totalorder %s696_s21, 1 }
  0x2d   : > { %p205_p3 = pnand %p923_p1, %p922_p0 }
  0x2e   : > { %s838_s13 = sand.u32 (!%p205_p3), 1, %s688_s19  }
  0x2f   : > { %208 = sbr.rel (%p205_p3) target bundleno = 809 (0x329), region = 40  ;;  %s519_s17 = sshll.u32 (!%p205_p3), %s838_s13, 5 }
  0x30   : > { %s211_s23 = scalar_lea.sflag (!%p205_p3), [#allocation3], %s838_s13  ;;  %s214_s15 = scalar_lea.vmem (!%p205_p3), [#allocation2], %s519_s17 }
  0x36   : > { %675 = dma.done.wait (%p776_p6), %s211_s23, 512  }
  0x37   : > { %677 = vsyncadd (%p776_p6), %s211_s23, 4294966784  ;;  %v241_v0 = vld [vmem:[%s214_s15] sm:$0xff]  ;;  %v242_v1 = vld [vmem:[%s214_s15 + $0x8] sm:$0xff]  ;;  %v699_v7 = vmov 0.0   ;;  %vm700_vm0 = vmmov 0   ;;  %vm253_vm1 = vcmask 64512  }
  0x38   : > { %v243_v2 = vld [vmem:[%s214_s15 + $0x10] sm:$0xff]  ;;  %v245_v3 = vadd.f32 %v242_v1, %v241_v0  ;;  %v244_v4 = vld [vmem:[%s214_s15 + $0x18] sm:$0xff]  ;;  %536 = vmatprep.subr.mxu0 %v699_v7  ;;  %541 = vmatprep.subr.mxu1 %v699_v7  ;;  %v251_v10 = vld [vmem:[%s911_s1] sm:$0xf]  ;;  %vm334_vm2 = vcmask 1043456   ;;  %vm330_vm3 = vcmask 31744  }
  0x39   : > { %538 = vmatprep.mubr.msk.f32.mxu0 %vm700_vm0, %v699_v7  ;;  %543 = vmatprep.mubr.msk.f32.mxu1 %vm700_vm0, %v699_v7  ;;  %v252_v11 = vld [vmem:[%s912_s2] sm:$0xf]  ;;  %v701_v17 = vmov 0   ;;  %s531_s7 = sshll.u32 %s754_s22, 9  ;;  %s240_s9 = scalar_lea.vmem [#allocation5], %s519_s17 }
  0x3a   : > { %v246_v5 = vadd.f32 %v245_v3, %v243_v2  ;;  %v328_v16 = vld [vmem:[%s913_s3] sm:$0xff]  ;;  %595 = vset.pattern.permute.xlu0 %v701_v17  ;;  %s442_s10 = sshll.u32 %s240_s9, 4  ;;  %s866_s15 = scalar_lea.hbm %s915_s5, %s531_s7  ;;  %s868_s10 = int_to_ptr.vmem [resolvable:$true] %s442_s10 }
  0x3b   : > { %v329_v18 = vld [vmem:[%s914_s4] sm:$0xff]  ;;  %s428_s22 = scalar_lea.sflag [#allocation4], %s838_s13  ;;  %s630_s17 = scalar_lea.vmem %s868_s10, 512 }
  0x3c   : > { %v247_v6 = vadd.f32 %v246_v5, %v244_v4  ;;  %p631_p6 = scmp.ne.s32.totalorder %s868_s10, %s630_s17  ;;  %p924_p11 = scmp.ne.s32.totalorder %s919_s30, 0 }
  0x3d   : > { %s702_s12 = smov [#allocation5]  }
  0x3e   : > { %248 = vadd.xlane.f32.xlu0 %v247_v6  ;;  %p632_p12 = pnand %p631_p6, %p924_p11  ;;  %s634_s14 = sshll.u32 %s702_s12, 4  ;;  %s635_s14 = int_to_ptr.vmem [resolvable:$false] %s634_s14 }
  0x3f   : > { %s636_s29 = scalar_lea.vmem %s635_s14, 1024  ;;  %p637_p7 = scmp.lt.s32.totalorder %s868_s10, %s635_s14 }
  0x40   : > { %p633_p13 = pneg %p632_p12  ;;  %p638_p10 = scmp.lt.s32.totalorder %s636_s29, %s630_s17 }
  0x42   : > { %p639_p2 = por %p638_p10, %p637_p7 }
  0x44   : > { %p640_p4 = pnand %p639_p2, %p633_p13 }
  0xcb   : > { %v249_v8 = vpop.xlane.xlu0 %248 }
  0xcc   : > { %v250_v9 = vmul.f32 0.001953125, %v249_v8 }
  0xce   : > { %537 = vmatpush3.msra.mxu0 %v250_v9 }
  0xcf   : > { %539 = vmatmul.mubr.msk.f32.vlgmr.msra.gmra.mrb[0].mxu0 %vm253_vm1, %v251_v10 }
 0x1a2   : > { %v323_v12 = vpop.f32.mrb[0].mxu0 }
 0x1a3   : > { %v324_v13 = vadd.f32 %v323_v12, %v252_v11  ;;  %v540_v14 = vpop.f32.mrb[1].mxu0 }
 0x1a5   : > { %v327_v15 = vmax.f32 %v324_v13, 0.0 }
 0x1a7   : > { %542 = vmatpush3.msk.msra.mxu1 %vm334_vm2, %v327_v15 }
 0x1a8   : > { %544 = vmatmul.mubr.msk.f32.vlgmr.msra.gmra.mrb[0].mxu1 %vm330_vm3, %v328_v16 }
 0x27b   : > { %v404_v19 = vpop.f32.mrb[0].mxu1 }
 0x27c   : > { %v405_v20 = vadd.f32 %v404_v19, %v329_v18  ;;  %v545_v21 = vpop.f32.mrb[1].mxu1 }
 0x27e   : > { %v524_v22 = vmul.f32 -1.442695, %v405_v20 }
 0x280   : > { %596 = vpow2.f32 %v524_v22 }
 0x28a   : > { %v597_v23 = vpop.eup %596 }
 0x28b   : > { %v411_v24 = vadd.f32 1.0, %v597_v23 }
 0x28d   : > { %598 = vrcp.f32 %v411_v24 }
 0x297   : > { %v599_v25 = vpop.eup %598 }
 0x298   : > { %416 = vperm.xlu0 %595, %v599_v25  }
 0x317   : > { %v417_v26 = vpop.permute.xlu0 %416 }
 0x318   : > { %v419_v27 = vmul.f32 %v417_v26, %v241_v0  ;;  %v420_v28 = vmul.f32 %v417_v26, %v242_v1  ;;  %v421_v29 = vmul.f32 %v417_v26, %v243_v2  ;;  %v422_v30 = vmul.f32 %v417_v26, %v244_v4 }
 0x31a   : > { %423 = vst [vmem:[%s240_s9] sm:$0xff] %v419_v27  ;;  %424 = vst [vmem:[%s240_s9 + $0x8] sm:$0xff] %v420_v28 }
 0x31b   : > { %425 = vst [vmem:[%s240_s9 + $0x10] sm:$0xff] %v421_v29  ;;  %426 = vst [vmem:[%s240_s9 + $0x18] sm:$0xff] %v422_v30 }
 0x31c   : > { %643 = shalt.err (!%p640_p4)
}
 0x31d   : > { %s644_s13 = scalar_lea.hbm %s866_s15, 512  ;;  %s648_s26 = scalar_lea.hbm %s915_s5, 1024 }
 0x31e   : > { %p645_p5 = scmp.ne.s32.totalorder %s866_s15, %s644_s13  ;;  %p649_p0 = scmp.lt.u32.totalorder %s866_s15, %s915_s5 }
 0x31f   : > { %p650_p1 = scmp.lt.u32.totalorder %s648_s26, %s644_s13  ;;  %p652_p6 = scmp.lt.u32.totalorder %s644_s13, %s866_s15 }
 0x320   : > { %p646_p8 = pnand %p645_p5, %p924_p11 }
 0x321   : > { %p651_p3 = por %p650_p1, %p649_p0 }
 0x322   : > { %p647_p9 = pneg %p646_p8 }
 0x323   : > { %p653_p12 = por %p652_p6, %p651_p3 }
 0x325   : > { %p654_p13 = pnand %p653_p12, %p647_p9 }
 0x327   : > { %657 = shalt.err (!%p654_p13)
}
 0x328   : > { %548 = dma.vmem_to_hbm [thread:$0]  (%p924_p11), %s868_s10, 512, %s866_s15, %s428_s22  }
 0x329 PF: > { %s454_s7 = sand.u32 1, %s684_s18   ;;  %p925_p7 = scmp.ne.s32.totalorder %s920_s6, 0 }
 0x32a   : > { %p926_p10 = scmp.ge.s32.totalorder %s696_s21, 2  ;;  %s455_s9 = scalar_lea.sflag [#allocation4], %s454_s7 }
 0x32c   : > { %p555_p2 = pnand %p926_p10, %p925_p7 }
 0x32e   : > { %679 = dma.done.wait (!%p555_p2), %s455_s9, 512  }
 0x32f   : > { %681 = vsyncadd (!%p555_p2), %s455_s9, 4294966784  ;;  %p18_p4 = scmp.ge.s32.totalorder %s758_s24, 4   ;;  %s927_s18 = smov %s688_s19 }
 0x330   : > { %s928_s19 = smov %s692_s20  ;;  %s929_s20 = smov %s770_s27 }
 0x331   : > { %s930_s21 = smov %s758_s24  ;;  %20 = sbr.rel (!%p18_p4) target bundleno = 5 (0x5), region = 85 }
 0x338   :  { %460 = vsyncpa [#allocation3], 1 }
 0x339   :  { %462 = vsyncpa [#allocation3 + $0x1], 1 }
 0x33a   :  { %463 = vsyncpa [#allocation4], 1 }
 0x33b   :  { %465 = vsyncpa [#allocation4 + $0x1], 1 }

</bundles_post_ra>
